<compile_context>
chip_gen: v5e
topology: v5e:2x2
jax: 0.10.0
libtpu: 0.0.40
codegen_flags: <defaults>
</compile_context>

<pallas_src>
import jax
import jax.numpy as jnp
from jax.experimental import pallas as pl
from jax.experimental.pallas import tpu as pltpu


def _rearrange_kernel(x_ref, o_ref):
    # x_ref: (1, V, Lt, D)   input slab (all variables for an L-tile of batch b)
    # o_ref: (1, Lt, V*D)    lane-dense contiguous output slab
    V = x_ref.shape[1]
    D = x_ref.shape[3]
    if D % 128 == 0:
        # Lane-aligned fast path: each per-v store targets a lane-aligned slab.
        for v in range(V):  # V is small & static: unrolled vreg copies
            o_ref[0, :, v * D:(v + 1) * D] = x_ref[0, v, :, :]
    else:
        # D not a multiple of 128: build the full lane-dense row once in vregs
        # and issue a single full-width store (no per-v masked/XLU stores).
        o_ref[0, :, :] = jnp.concatenate(
            [x_ref[0, v, :, :] for v in range(V)], axis=-1)


def _divisors(n):
    divs = set()
    i = 1
    while i * i <= n:
        if n % i == 0:
            divs.add(i)
            divs.add(n // i)
        i += 1
    return sorted(divs)


def _vmem_capacity_bytes():
    """Physical VMEM per TensorCore; conservative fallback if query fails."""
    try:
        info = pltpu.get_tpu_info()
        cap = getattr(info, "vmem_capacity_bytes", None)
        if cap:
            return int(cap)
    except Exception:
        pass
    return 64 * 1024 * 1024  # v7x per-TC size: safe lower bound for all gens


def _choose_l_tile(B, L, V, D, itemsize, budget_bytes,
                   min_total_steps=8, min_split_bytes=2 * 1024 * 1024):
    """Largest L-tile that (a) fits the double-buffered VMEM budget, (b) leaves
    >= min_total_steps grid steps for non-trivial problems (pipelining + both
    v7x TensorCores), and (c) divides L exactly (no ragged last tile)."""
    # sublane packing: 8 rows for 4-byte, 16 for 2-byte, 32 for 1-byte dtypes
    sub = max(8, 32 // max(1, itemsize))
    row_bytes = V * D * itemsize               # bytes per L-row (in == out size)
    bufs = 4                                   # 2 input buffers + 2 output buffers
    max_lt = max(1, budget_bytes // (bufs * row_bytes))

    total_bytes = B * L * row_bytes            # one full copy of the tensor
    if total_bytes > min_split_bytes:
        # Guarantee several pipelined steps (and >=2 per 'parallel' axis for v7x).
        n_lt_min = max(1, -(-min_total_steps // B))   # ceil(min_steps / B)
        max_lt = min(max_lt, max(1, L // n_lt_min))

    cand = [d for d in _divisors(L) if d <= max_lt]
    aligned = [d for d in cand if d % sub == 0 or d == L]
    if aligned:
        return max(aligned)
    if cand:
        return max(cand)
    # No divisor fits (tiny budget): fall back to a sublane-aligned tile with a
    # (correct, padded) ragged tail.
    return max(sub, (max_lt // sub) * sub) if max_lt >= sub else max(1, max_lt)


def pred_rearrange(x, aggregated_variables, num_patches, embed_dim):
    """Pallas implementation of Pred_Rearrange.forward.

    x: (B, V*L, D)  ->  (B, L, V*D)
    """
    V, L, D = aggregated_variables, num_patches, embed_dim
    B = x.shape[0]
    assert x.shape == (B, V * L, D)

    itemsize = jnp.dtype(x.dtype).itemsize
    # Metadata-only reshape: tokens are v-major, so this is a free view.
    x4 = x.reshape(B, V, L, D)

    vmem_cap = _vmem_capacity_bytes()
    # Generation-aware live-buffer budget: 32 MiB on v5e/v6e (128 MiB VMEM),
    # 16 MiB on v7x (64 MiB per TC), capped at 48 MiB.
    budget_bytes = min(vmem_cap // 4, 48 * 1024 * 1024)

    Lt = _choose_l_tile(B, L, V, D, itemsize, budget_bytes)
    n_lt = pl.cdiv(L, Lt)

    # Tie the compiler VMEM limit to the actual live footprint (headroom over
    # the 4 double-buffered blocks), clamped to half the physical VMEM.
    live_bytes = 4 * Lt * V * D * itemsize
    vmem_limit = int(min(vmem_cap // 2, max(2 * live_bytes, 16 * 1024 * 1024)))

    out_shape = jax.ShapeDtypeStruct((B, L, V * D), x.dtype)

    in_spec = pl.BlockSpec((1, V, Lt, D), lambda b, lt: (b, 0, lt, 0))
    out_spec = pl.BlockSpec((1, Lt, V * D), lambda b, lt: (b, lt, 0))

    total_bytes = 2 * B * V * L * D * itemsize  # read + write

    return pl.pallas_call(
        _rearrange_kernel,
        out_shape=out_shape,
        grid=(B, n_lt),
        in_specs=[in_spec],
        out_specs=out_spec,
        cost_estimate=pl.CostEstimate(
            flops=0, transcendentals=0, bytes_accessed=total_bytes
        ),
        compiler_params=pltpu.CompilerParams(
            # Pure copy, every grid step writes a disjoint output block:
            # both axes parallel so v7x's 2 TensorCores split the work.
            dimension_semantics=("parallel", "parallel"),
            vmem_limit_bytes=vmem_limit,
        ),
    )(x4)


def _reference(x, V, L, D):
    B = x.shape[0]
    return x.reshape(B, V, L, D).transpose(0, 2, 1, 3).reshape(B, L, V * D)


if __name__ == "__main__":
    key = jax.random.PRNGKey(0)

    # Primary check: B=2, V=4 aggregated variables, L=8 patches, D=128 embed dim
    # (lane-aligned fast path).
    B, V, L, D = 2, 4, 8, 128
    x = jax.random.normal(key, (B, V * L, D), dtype=jnp.float32)
    out = pred_rearrange(x, aggregated_variables=V, num_patches=L, embed_dim=D)
    out = jax.block_until_ready(out)
    assert out.shape == (B, L, V * D), out.shape
    assert jnp.array_equal(out, _reference(x, V, L, D)), "mismatch (D=128 path)"

    # Secondary check: D not a multiple of 128 exercises the concatenate path.
    B2, V2, L2, D2 = 2, 4, 8, 96
    x2 = jax.random.normal(jax.random.PRNGKey(1), (B2, V2 * L2, D2),
                           dtype=jnp.float32)
    out2 = pred_rearrange(x2, aggregated_variables=V2, num_patches=L2,
                          embed_dim=D2)
    out2 = jax.block_until_ready(out2)
    assert jnp.array_equal(out2, _reference(x2, V2, L2, D2)), \
        "mismatch (non-128 D path)"

    print("KERNEL_OK")
</pallas_src>

<mosaic_0001>
module attributes {stable_mosaic.version = 11 : i64} {
  func.func @_rearrange_kernel(%arg0: i32, %arg1: i32, %arg2: memref<1x4x8x128xf32, #tpu.memory_space<vmem>>, %arg3: memref<1x8x512xf32, #tpu.memory_space<vmem>>) attributes {dimension_semantics = [#tpu.dimension_semantics<parallel>, #tpu.dimension_semantics<parallel>], iteration_bounds = array<i64: 2, 1>, scalar_prefetch = 0 : i64, scratch_operands = 0 : i64, tpu.core_type = #tpu.core_type<tc>, window_params = [{transform_indices = @transform_0, window_bounds = array<i64: 1, 4, 8, 128>}, {transform_indices = @transform_1, window_bounds = array<i64: 1, 8, 512>}]} {
    %c0 = arith.constant 0 : index
    %c0_0 = arith.constant 0 : index
    %c0_1 = arith.constant 0 : index
    %c0_2 = arith.constant 0 : index
    %0 = vector.load %arg2[%c0, %c0_0, %c0_1, %c0_2] : memref<1x4x8x128xf32, #tpu.memory_space<vmem>>, vector<1x1x8x128xf32>
    %1 = vector.shape_cast %0 : vector<1x1x8x128xf32> to vector<8x128xf32>
    %c0_3 = arith.constant 0 : index
    %c0_4 = arith.constant 0 : index
    %c0_5 = arith.constant 0 : index
    %2 = vector.load %arg3[%c0_3, %c0_4, %c0_5] : memref<1x8x512xf32, #tpu.memory_space<vmem>>, vector<1x8x128xf32>
    %3 = vector.shape_cast %2 : vector<1x8x128xf32> to vector<8x128xf32>
    %4 = vector.shape_cast %1 : vector<8x128xf32> to vector<1x8x128xf32>
    tpu.vector_store %arg3[%c0_3, %c0_4, %c0_5], %4 {strides = array<i32>} : memref<1x8x512xf32, #tpu.memory_space<vmem>>, vector<1x8x128xf32>,
    %c0_6 = arith.constant 0 : index
    %c1 = arith.constant 1 : index
    %c0_7 = arith.constant 0 : index
    %c0_8 = arith.constant 0 : index
    %5 = vector.load %arg2[%c0_6, %c1, %c0_7, %c0_8] : memref<1x4x8x128xf32, #tpu.memory_space<vmem>>, vector<1x1x8x128xf32>
    %6 = vector.shape_cast %5 : vector<1x1x8x128xf32> to vector<8x128xf32>
    %c0_9 = arith.constant 0 : index
    %c0_10 = arith.constant 0 : index
    %c128 = arith.constant 128 : index
    %7 = vector.load %arg3[%c0_9, %c0_10, %c128] : memref<1x8x512xf32, #tpu.memory_space<vmem>>, vector<1x8x128xf32>
    %8 = vector.shape_cast %7 : vector<1x8x128xf32> to vector<8x128xf32>
    %9 = vector.shape_cast %6 : vector<8x128xf32> to vector<1x8x128xf32>
    tpu.vector_store %arg3[%c0_9, %c0_10, %c128], %9 {strides = array<i32>} : memref<1x8x512xf32, #tpu.memory_space<vmem>>, vector<1x8x128xf32>,
    %c0_11 = arith.constant 0 : index
    %c2 = arith.constant 2 : index
    %c0_12 = arith.constant 0 : index
    %c0_13 = arith.constant 0 : index
    %10 = vector.load %arg2[%c0_11, %c2, %c0_12, %c0_13] : memref<1x4x8x128xf32, #tpu.memory_space<vmem>>, vector<1x1x8x128xf32>
    %11 = vector.shape_cast %10 : vector<1x1x8x128xf32> to vector<8x128xf32>
    %c0_14 = arith.constant 0 : index
    %c0_15 = arith.constant 0 : index
    %c256 = arith.constant 256 : index
    %12 = vector.load %arg3[%c0_14, %c0_15, %c256] : memref<1x8x512xf32, #tpu.memory_space<vmem>>, vector<1x8x128xf32>
    %13 = vector.shape_cast %12 : vector<1x8x128xf32> to vector<8x128xf32>
    %14 = vector.shape_cast %11 : vector<8x128xf32> to vector<1x8x128xf32>
    tpu.vector_store %arg3[%c0_14, %c0_15, %c256], %14 {strides = array<i32>} : memref<1x8x512xf32, #tpu.memory_space<vmem>>, vector<1x8x128xf32>,
    %c0_16 = arith.constant 0 : index
    %c3 = arith.constant 3 : index
    %c0_17 = arith.constant 0 : index
    %c0_18 = arith.constant 0 : index
    %15 = vector.load %arg2[%c0_16, %c3, %c0_17, %c0_18] : memref<1x4x8x128xf32, #tpu.memory_space<vmem>>, vector<1x1x8x128xf32>
    %16 = vector.shape_cast %15 : vector<1x1x8x128xf32> to vector<8x128xf32>
    %c0_19 = arith.constant 0 : index
    %c0_20 = arith.constant 0 : index
    %c384 = arith.constant 384 : index
    %17 = vector.load %arg3[%c0_19, %c0_20, %c384] : memref<1x8x512xf32, #tpu.memory_space<vmem>>, vector<1x8x128xf32>
    %18 = vector.shape_cast %17 : vector<1x8x128xf32> to vector<8x128xf32>
    %19 = vector.shape_cast %16 : vector<8x128xf32> to vector<1x8x128xf32>
    tpu.vector_store %arg3[%c0_19, %c0_20, %c384], %19 {strides = array<i32>} : memref<1x8x512xf32, #tpu.memory_space<vmem>>, vector<1x8x128xf32>,
    return
  }
  func.func @transform_0(%arg0: i32, %arg1: i32) -> (i32, i32, i32, i32) {
    %c0_i32 = arith.constant 0 : i32
    %c0_i32_0 = arith.constant 0 : i32
    %c0_i32_1 = arith.constant 0 : i32
    return %arg0, %c0_i32, %arg1, %c0_i32_0 : i32, i32, i32, i32
  }
  func.func @transform_1(%arg0: i32, %arg1: i32) -> (i32, i32, i32) {
    %c0_i32 = arith.constant 0 : i32
    %c0_i32_0 = arith.constant 0 : i32
    return %arg0, %arg1, %c0_i32 : i32, i32, i32
  }
}

</mosaic_0001>

<bundles_post_ra>
// kernel: tpu_custom_call.1
= control target key start
LH: loop header
LB: loop body
LE: loop exit
PB: predicated region body
PF: predicated region fallthrough
CT: control target
= control target key end

     0   :  { %6 = vsyncpa [#allocation3], 0  ;;  %s597_s0 = inlined_call_operand.hbm [shape: f32[2,4,8,128], index: 0, kind: input, shape index: {}]   ;;  %s598_s1 = inlined_call_operand.hbm [shape: f32[2,8,512], index: 1, kind: output, shape index: {}]  }
   0x1   :  { %8 = vsyncpa [#allocation3 + $0x1], 0 }
   0x2   :  { %9 = vsyncpa [#allocation4], 0 }
   0x3   :  { %11 = vsyncpa [#allocation4 + $0x1], 0  ;;  %s477_s6 = smov 0   ;;  %s479_s7 = smov 0  }
   0x4   :  { %s481_s8 = smov 0   ;;  %s483_s9 = smov 0  }
   0x5   :  { %s485_s10 = smov 0   ;;  %s487_s11 = smov 0  }
   0x6 LB: > { %s267_s12 = sadd.s32 4294967295, %s463_s11   ;;  %s268_s13 = sadd.s32 4294967294, %s463_s11   ;;  %s463_s11 = sphi %s487_s11, %s17_s11   ;;  %s459_s10 = sphi %s485_s10, %s607_s10   ;;  %s455_s9 = sphi %s483_s9, %s606_s9   ;;  %s451_s8 = sphi %s481_s8, %s605_s8   ;;  %s447_s7 = sphi %s479_s7, %s604_s7   ;;  %s443_s6 = sphi %s477_s6, %s603_s6  }
   0x7   : > { %s29_s14 = sadd.s32 1, %s459_s10  ;;  %s38_s15 = sadd.s32 1, %s451_s8 }
   0x8   : > { %p31_p0 = scmp.ge.s32.totalorder %s29_s14, 2  ;;  %p45_p1 = scmp.ne.s32.totalorder %s451_s8, %s447_s7 }
   0x9   : > { %p46_p2 = scmp.eq.s32.totalorder %s463_s11, 0  ;;  %p51_p3 = scmp.ne.s32.totalorder %s447_s7, %s443_s6 }
   0xa   : > { %s609_s14 = smov (%p31_p0, %s29_s14), 0  ;;  %p52_p5 = scmp.eq.s32.totalorder %s267_s12, 0 }
   0xb   : > { %p518_p4 = por %p46_p2, %p45_p1  ;;  %s33_s17 = ssub.s32 %s459_s10, %s609_s14 }
   0xc   : > { %p77_p6 = scmp.eq.s32.totalorder %s267_s12, 1  ;;  %p36_p7 = scmp.eq.s32.totalorder %s33_s17, 0 }
   0xd   : > { %p524_p8 = por %p52_p5, %p51_p3  ;;  %p83_p10 = scmp.eq.s32.totalorder %s268_s13, 1 }
   0xe   : > { %p528_p9 = por %p77_p6, %p45_p1  ;;  %p270_p12 = scmp.ge.s32.totalorder %s463_s11, 2 }
   0xf   : > { %s533_s20 = scalar_select %p36_p7, %s451_s8, %s38_s15  }
  0x10   : > { %p535_p11 = por %p83_p10, %p51_p3  ;;  %p299_p13 = scmp.lt.s32.totalorder %s463_s11, 2 }
  0x11   : > { %s103_s22 = sand.u32 1, %s451_s8   ;;  %s285_s24 = sshll.u32 %s459_s10, 5 }
  0x12   : > { %s271_s23 = sshll.u32 %s103_s22, 5  ;;  %s113_s27 = scalar_lea.hbm %s597_s0, %s285_s24 }
  0x13   : > { %s107_s28 = scalar_lea.vmem [#allocation2], %s271_s23  ;;  %s114_s30 = sshll.u32 %s113_s27, 4  ;;  %s115_s30 = int_to_ptr.hbm [resolvable:$true] %s114_s30 }
  0x14   : > { %s116_s29 = sshll.u32 %s107_s28, 4  ;;  %p292_p0 = pnand %p299_p13, %p518_p4  ;;  %s117_s29 = int_to_ptr.vmem [resolvable:$true] %s116_s29 }
  0x15   : > { %p274_p1 = scmp.ge.s32.totalorder %s463_s11, 1  ;;  %s104_s2 = scalar_lea.sflag [#allocation3], %s103_s22 }
  0x16   : > { %s465_s3 = smov 128   ;;  %s466_s4 = smov 8  }
  0x17   : > { %294 = dma.hbm_to_vmem [thread:$0]  (!%p292_p0), %s115_s30, 512, %s117_s29, %s104_s2, %s465_s3, %s465_s3, %s466_s4  }
  0x18   : > { %p124_p2 = scmp.lt.s32.totalorder %s463_s11, 3 }
  0x1a   : > { %p125_p3 = pnand %p274_p1, %p124_p2 }
  0x1b   : > { %s551_s5 = sand.u32 (!%p125_p3), 1, %s447_s7  }
  0x1c   : > { %128 = sbr.rel (%p125_p3) target bundleno = 49 (0x31), region = 24  ;;  %s275_s12 = sshll.u32 (!%p125_p3), %s551_s5, 5 }
  0x1d   : > { %s131_s13 = scalar_lea.sflag (!%p125_p3), [#allocation3], %s551_s5  ;;  %s134_s15 = scalar_lea.vmem (!%p125_p3), [#allocation2], %s275_s12 }
  0x21   : > { %434 = dma.done.wait (%p524_p8), %s131_s13, 512  }
  0x22   : > { %436 = vsyncadd (%p524_p8), %s131_s13, 4294966784  ;;  %s286_s16 = sshll.u32 %s455_s9, 5  ;;  %s153_s24 = scalar_lea.vmem [#allocation5], %s275_s12  ;;  %v154_v0 = vld [vmem:[%s134_s15] sm:$0xff]  ;;  %v277_v1 = vld [vmem:[%s134_s15 + $0x8] sm:$0xff] }
  0x23   : > { %s179_s23 = scalar_lea.hbm %s598_s1, %s286_s16  ;;  %s181_s25 = sshll.u32 %s153_s24, 4  ;;  %v278_v2 = vld [vmem:[%s134_s15 + $0x10] sm:$0xff]  ;;  %155 = vst [vmem:[%s153_s24] sm:$0xff] %v154_v0  ;;  %v279_v3 = vld [vmem:[%s134_s15 + $0x18] sm:$0xff]  ;;  %s182_s25 = int_to_ptr.vmem [resolvable:$true] %s181_s25 }
  0x24   : > { %s183_s26 = sshll.u32 %s179_s23, 4  ;;  %158 = vst [vmem:[%s153_s24 + $0x8] sm:$0xff] %v277_v1  ;;  %s166_s18 = scalar_lea.sflag [#allocation4], %s551_s5  ;;  %s184_s26 = int_to_ptr.hbm [resolvable:$true] %s183_s26 }
  0x25   : > { %161 = vst [vmem:[%s153_s24 + $0x10] sm:$0xff] %v278_v2  ;;  %s395_s9 = sshra.s32 %s184_s26, 4  ;;  %s401_s30 = scalar_lea.hbm %s598_s1, 64  ;;  %s396_s9 = int_to_ptr.hbm [resolvable:$true] %s395_s9 }
  0x26   : > { %164 = vst [vmem:[%s153_s24 + $0x18] sm:$0xff] %v279_v3  ;;  %s397_s27 = scalar_lea.hbm %s396_s9, 32  ;;  %p402_p7 = scmp.lt.s32.totalorder %s396_s9, %s598_s1 }
  0x27   : > { %p398_p4 = scmp.ne.s32.totalorder %s396_s9, %s397_s27  ;;  %p403_p8 = scmp.lt.s32.totalorder %s401_s30, %s397_s27 }
  0x29   : > { %p399_p5 = pnand %p398_p4, %p528_p9  ;;  %p404_p10 = por %p403_p8, %p402_p7 }
  0x2b   : > { %p400_p6 = pneg %p399_p5 }
  0x2d   : > { %p405_p13 = pnand %p404_p10, %p400_p6 }
  0x2f   : > { %408 = shalt.err (!%p405_p13)
}
  0x30   : > { %289 = dma.vmem_to_hbm [thread:$0]  (%p528_p9), %s182_s25, 512, %s184_s26, %s166_s18  }
  0x31 PF: > { %s195_s4 = sand.u32 1, %s443_s6   ;;  %p296_p0 = pnand %p270_p12, %p535_p11 }
  0x32   : > { %s196_s5 = scalar_lea.sflag [#allocation4], %s195_s4 }
  0x33   : > { %p297_p1 = pneg %p296_p0 }
  0x35   : > { %438 = dma.done.wait (%p297_p1), %s196_s5, 512  }
  0x36   : > { %440 = vsyncadd (%p297_p1), %s196_s5, 4294966784  ;;  %s17_s11 = sadd.s32 1, %s463_s11   ;;  %s603_s6 = smov %s447_s7 }
  0x37   : > { %p14_p2 = scmp.ge.s32.totalorder %s17_s11, 4   ;;  %s604_s7 = smov %s451_s8 }
  0x38   : > { %s605_s8 = smov %s533_s20  ;;  %s606_s9 = smov %s459_s10 }
  0x39   : > { %s607_s10 = smov %s609_s14  ;;  %16 = sbr.rel (!%p14_p2) target bundleno = 6 (0x6), region = 72 }
  0x3e   :  { %202 = vsyncpa [#allocation3], 1 }
  0x3f   :  { %204 = vsyncpa [#allocation3 + $0x1], 1 }
  0x40   :  { %205 = vsyncpa [#allocation4], 1 }
  0x41   :  { %207 = vsyncpa [#allocation4 + $0x1], 1 }

</bundles_post_ra>
